<compile_context>
chip_gen: v6e
topology: v6e:2x2x1
jax: 0.10.0
libtpu: 0.0.40
codegen_flags: <defaults>
</compile_context>

<pallas_src>
import jax
import jax.numpy as jnp
from jax import lax
from jax.experimental import pallas as pl
from jax.experimental.pallas import tpu as pltpu

SMALL_VOCAB = 512       # one-hot MXU path only below this vocab size
TOKEN_BLOCK_MAX = 256   # max output rows per grid step
MIN_BLOCK = 32          # multiple of 32 keeps f32/bf16/int8 layouts legal
N_INFLIGHT = 8          # concurrent row DMAs on the HBM-gather path


def _round_up(x: int, m: int) -> int:
    return ((x + m - 1) // m) * m


def _vmem_budget_bytes() -> int:
    """Generation-aware usable-VMEM budget (~102 MiB v5e/v6e, ~51 MiB v7x)."""
    cap = None
    try:
        cap = getattr(pltpu.get_tpu_info(), "vmem_capacity_bytes", None)
    except Exception:
        cap = None
    if not cap:
        cap = 64 * 1024 * 1024   # assume the smallest (v7x-like) part
    return int(0.80 * int(cap))


def _pick_token_block(n: int, d_pad: int, itemsize: int) -> int:
    tb = TOKEN_BLOCK_MAX
    # keep double-buffered output tiles <= ~8 MiB (v7x's 64 MiB VMEM)
    while tb > MIN_BLOCK and 2 * tb * d_pad * itemsize > (8 << 20):
        tb //= 2
    # don't allocate blocks much larger than the actual amount of work
    while tb > MIN_BLOCK and tb >= 2 * _round_up(max(n, 1), MIN_BLOCK):
        tb //= 2
    # >= 2 grid steps when possible so "parallel" can shard across v7x's 2 TCs
    while tb > MIN_BLOCK and _round_up(max(n, 1), tb) // tb < 2 and n > MIN_BLOCK:
        tb //= 2
    return max(tb, MIN_BLOCK)


# --------------------------------------------------------------------------
# Kernels
# --------------------------------------------------------------------------

def _onehot_kernel(ids_ref, emb_ref, out_ref):
    """Small-V path: gather expressed as a one-hot MXU matmul.

    ids_ref : VMEM (tb, 1) int32
    emb_ref : VMEM (V, d_pad)   -- whole table, resident once
    out_ref : VMEM (tb, d_pad)
    """
    tb = out_ref.shape[0]
    vocab = emb_ref.shape[0]
    ids = ids_ref[...]
    iota = lax.broadcasted_iota(jnp.int32, (tb, vocab), 1)
    # one-hot built directly in the MXU input dtype (single compare+select)
    onehot = jnp.where(ids == iota,
                       jnp.ones((), emb_ref.dtype),
                       jnp.zeros((), emb_ref.dtype))
    out_ref[...] = jnp.dot(onehot, emb_ref[...],
                           preferred_element_type=jnp.float32).astype(out_ref.dtype)


def _vmem_gather_kernel(ids_ref, emb_ref, out_ref):
    """Table resident in VMEM; per-row dynamic-slice gather.

    ids_ref : SMEM (n_pad,) int32  (scalar prefetch: whole flattened id array)
    emb_ref : VMEM (V, d_pad)
    out_ref : VMEM (tb, d_pad)
    """
    tile = pl.program_id(0)
    tb = out_ref.shape[0]
    vmax = emb_ref.shape[0] - 1
    base = tile * tb

    def body(t, carry):
        tok = jnp.clip(ids_ref[base + t], 0, vmax)
        out_ref[pl.ds(t, 1), :] = emb_ref[pl.ds(tok, 1), :]
        return carry

    lax.fori_loop(0, tb, body, 0, unroll=8)


def _hbm_gather_kernel(ids_ref, emb_hbm_ref, out_ref, sem):
    """Table stays in HBM; manual per-row DMA gather, N_INFLIGHT copies deep.

    ids_ref     : SMEM (n_pad,) int32
    emb_hbm_ref : HBM  (V, d_pad)   (memory_space=pl.ANY)
    out_ref     : VMEM (tb, d_pad)  (rows DMA'd straight into the output tile)
    sem         : DMA semaphores, shape (N_INFLIGHT,)
    """
    tile = pl.program_id(0)
    tb = out_ref.shape[0]
    vmax = emb_hbm_ref.shape[0] - 1
    base = tile * tb

    def issue(t):
        tok = jnp.clip(ids_ref[base + t], 0, vmax)
        pltpu.make_async_copy(emb_hbm_ref.at[tok], out_ref.at[t],
                              sem.at[t % N_INFLIGHT]).start()

    def wait(t):
        # same-shaped descriptor; only the byte count matters for the wait
        pltpu.make_async_copy(emb_hbm_ref.at[0], out_ref.at[t],
                              sem.at[t % N_INFLIGHT]).wait()

    nwarm = min(N_INFLIGHT, tb)

    def warm_body(t, carry):
        issue(t)
        return carry

    def steady_body(t, carry):
        wait(t - N_INFLIGHT)
        issue(t)
        return carry

    def drain_body(t, carry):
        wait(t)
        return carry

    lax.fori_loop(0, nwarm, warm_body, 0)
    lax.fori_loop(nwarm, tb, steady_body, 0)
    lax.fori_loop(tb - nwarm, tb, drain_body, 0)


# --------------------------------------------------------------------------
# Wrapper
# --------------------------------------------------------------------------

def embedding_lookup(token_ids: jax.Array, embeddings: jax.Array,
                     *, path: str = "auto") -> jax.Array:
    """Pallas equivalent of `embeddings[token_ids]` for arbitrary-shaped ids."""
    orig_shape = token_ids.shape
    V, D = embeddings.shape
    out_dtype = embeddings.dtype
    itemsize = jnp.dtype(out_dtype).itemsize

    # Pad embedding dim once so every output store is lane-dense (x128).
    d_pad = _round_up(D, 128)
    emb = embeddings if d_pad == D else jnp.pad(embeddings, ((0, 0), (0, d_pad - D)))

    flat = token_ids.reshape(-1).astype(jnp.int32)
    n = int(flat.shape[0])

    tb = _pick_token_block(n, d_pad, itemsize)
    n_pad = _round_up(max(n, 1), tb)
    if n_pad != n:
        flat = jnp.pad(flat, (0, n_pad - n))
    grid = (n_pad // tb,)

    budget = _vmem_budget_bytes()
    table_bytes = V * d_pad * itemsize
    tile_bytes = tb * d_pad * itemsize
    # one resident table copy + double-buffered output tiles + slack
    resident_bytes = table_bytes + 2 * tile_bytes + (2 << 20)

    if path == "auto":
        if resident_bytes > budget:
            path = "hbm"
        elif V <= SMALL_VOCAB:
            path = "onehot"
        else:
            path = "vmem"

    out_shape = jax.ShapeDtypeStruct((n_pad, d_pad), out_dtype)

    if path == "onehot":
        ids2d = flat.reshape(n_pad, 1)
        # budget the in-kernel (tb, V) iota + mask + one-hot intermediates
        onehot_tmp_bytes = tb * V * (4 + 1 + itemsize)
        vmem_limit = int(min(max(resident_bytes + onehot_tmp_bytes, 32 << 20), budget))
        cost = pl.CostEstimate(
            flops=2 * n_pad * V * d_pad,
            transcendentals=0,
            bytes_accessed=table_bytes + n_pad * 4 + n_pad * d_pad * itemsize)
        out = pl.pallas_call(
            _onehot_kernel,
            out_shape=out_shape,
            grid=grid,
            in_specs=[
                pl.BlockSpec((tb, 1), lambda i: (i, 0)),
                pl.BlockSpec(memory_space=pltpu.MemorySpace.VMEM),
            ],
            out_specs=pl.BlockSpec((tb, d_pad), lambda i: (i, 0)),
            compiler_params=pltpu.CompilerParams(
                dimension_semantics=("parallel",), vmem_limit_bytes=vmem_limit),
            cost_estimate=cost,
        )(ids2d, emb)

    elif path == "vmem":
        vmem_limit = int(min(max(resident_bytes, 32 << 20), budget))
        cost = pl.CostEstimate(
            flops=0, transcendentals=0,
            bytes_accessed=table_bytes + n_pad * 4 + n_pad * d_pad * itemsize)
        out = pl.pallas_call(
            _vmem_gather_kernel,
            out_shape=out_shape,
            grid_spec=pltpu.PrefetchScalarGridSpec(
                num_scalar_prefetch=1,
                grid=grid,
                in_specs=[pl.BlockSpec(memory_space=pltpu.MemorySpace.VMEM)],
                out_specs=pl.BlockSpec((tb, d_pad), lambda i, ids: (i, 0)),
            ),
            compiler_params=pltpu.CompilerParams(
                dimension_semantics=("parallel",), vmem_limit_bytes=vmem_limit),
            cost_estimate=cost,
        )(flat, emb)

    elif path == "hbm":
        vmem_limit = int(min(max(2 * tile_bytes + (4 << 20), 32 << 20), budget))
        cost = pl.CostEstimate(
            flops=0, transcendentals=0,
            bytes_accessed=n_pad * 4 + 2 * n_pad * d_pad * itemsize)
        out = pl.pallas_call(
            _hbm_gather_kernel,
            out_shape=out_shape,
            grid_spec=pltpu.PrefetchScalarGridSpec(
                num_scalar_prefetch=1,
                grid=grid,
                in_specs=[pl.BlockSpec(memory_space=pl.ANY)],
                out_specs=pl.BlockSpec((tb, d_pad), lambda i, ids: (i, 0)),
                scratch_shapes=[pltpu.SemaphoreType.DMA((N_INFLIGHT,))],
            ),
            compiler_params=pltpu.CompilerParams(
                dimension_semantics=("parallel",), vmem_limit_bytes=vmem_limit),
            cost_estimate=cost,
        )(flat, emb)
    else:
        raise ValueError(f"unknown path {path!r}")

    if n_pad != n or d_pad != D:
        out = out[:n, :D]
    return out.reshape(*orig_shape, D)


def init_embedding(key: jax.Array, num_embeddings: int, embedding_dim: int,
                   dtype=jnp.float32) -> jax.Array:
    """Truncated-normal init (mean=0, std=1, clipped to [-3, 3]), matching
    nn.init.trunc_normal_(mean=0, std=1, a=-3, b=3)."""
    return jax.random.truncated_normal(
        key, -3.0, 3.0, (num_embeddings, embedding_dim)).astype(dtype)


if __name__ == "__main__":
    key = jax.random.PRNGKey(0)
    k_emb, k_ids = jax.random.split(key)

    # Main test: shapes consistent with the module (small vocab, small batch).
    num_embeddings = 64    # vocab size
    embedding_dim = 128    # lane-aligned embedding dim
    batch, seq = 2, 8      # token_ids shape (2, 8)

    embeddings = init_embedding(k_emb, num_embeddings, embedding_dim)
    token_ids = jax.random.randint(k_ids, (batch, seq), 0, num_embeddings,
                                   dtype=jnp.int32)

    out = jax.block_until_ready(embedding_lookup(token_ids, embeddings))
    ref = embeddings[token_ids]
    assert out.shape == (batch, seq, embedding_dim)
    assert jnp.allclose(out, ref), "Pallas embedding lookup mismatch (auto path)"

    # Exercise the other paths at small deterministic shapes.
    k1, k2 = jax.random.split(k_emb)
    emb2 = init_embedding(k1, 1024, 96)   # D=96 -> exercises lane padding to 128
    ids2 = jax.random.randint(k2, (3, 37), 0, 1024, dtype=jnp.int32)
    ref2 = emb2[ids2]

    # VMEM-resident row-gather path.
    out_vmem = jax.block_until_ready(embedding_lookup(ids2, emb2, path="vmem"))
    assert out_vmem.shape == (3, 37, 96)
    assert jnp.allclose(out_vmem, ref2), "Pallas embedding mismatch (vmem gather)"

    # HBM-resident manual-DMA gather path (forced; table would normally fit).
    out_hbm = jax.block_until_ready(embedding_lookup(ids2, emb2, path="hbm"))
    assert jnp.allclose(out_hbm, ref2), "Pallas embedding mismatch (hbm DMA gather)"

    print("KERNEL_OK")
</pallas_src>

<mosaic_0001>
module attributes {stable_mosaic.version = 11 : i64} {
  func.func @_onehot_kernel(%arg0: i32, %arg1: memref<32x1xi32, #tpu.memory_space<vmem>>, %arg2: memref<64x128xf32, #tpu.memory_space<vmem>>, %arg3: memref<32x128xf32, #tpu.memory_space<vmem>>) attributes {dimension_semantics = [#tpu.dimension_semantics<parallel>], iteration_bounds = array<i64: 1>, scalar_prefetch = 0 : i64, scratch_operands = 0 : i64, tpu.core_type = #tpu.core_type<tc>, window_params = [{transform_indices = @transform_0, window_bounds = array<i64: 32, 1>}, {pipeline_mode = #tpu.pipeline_mode<synchronous>, transform_indices = @transform_1, window_bounds = array<i64: 64, 128>}, {transform_indices = @transform_2, window_bounds = array<i64: 32, 128>}]} {
    %c0 = arith.constant 0 : index
    %c0_0 = arith.constant 0 : index
    %0 = vector.load %arg1[%c0, %c0_0] : memref<32x1xi32, #tpu.memory_space<vmem>>, vector<32x1xi32>
    %1 = tpu.iota {dimensions = array<i32: 1>} : vector<32x64xi32>
    %2 = vector.broadcast %0 : vector<32x1xi32> to vector<32x64xi32>
    %3 = arith.cmpi eq, %2, %1 : vector<32x64xi32>
    %cst = arith.constant 1.000000e+00 : f32
    %cst_1 = arith.constant 0.000000e+00 : f32
    %4 = vector.broadcast %cst : f32 to vector<32x64xf32>
    %5 = vector.broadcast %cst_1 : f32 to vector<32x64xf32>
    %6 = arith.select %3, %4, %5 : vector<32x64xi1>, vector<32x64xf32>
    %c0_2 = arith.constant 0 : index
    %c0_3 = arith.constant 0 : index
    %7 = vector.load %arg2[%c0_2, %c0_3] : memref<64x128xf32, #tpu.memory_space<vmem>>, vector<64x128xf32>
    %cst_4 = arith.constant dense<0.000000e+00> : vector<32x128xf32>
    %8 = tpu.matmul %6, %7, %cst_4 {dimension_numbers = #tpu.dot_dimension_numbers<[1], [0], [0], [1], [0, 0, 1, 1], [], []>} : vector<32x64xf32>, vector<64x128xf32>, vector<32x128xf32> -> vector<32x128xf32>
    %c0_5 = arith.constant 0 : index
    %c0_6 = arith.constant 0 : index
    %9 = vector.load %arg3[%c0_5, %c0_6] : memref<32x128xf32, #tpu.memory_space<vmem>>, vector<32x128xf32>
    tpu.vector_store %arg3[%c0_5, %c0_6], %8 {strides = array<i32>} : memref<32x128xf32, #tpu.memory_space<vmem>>, vector<32x128xf32>,
    return
  }
  func.func @transform_0(%arg0: i32) -> (i32, i32) {
    %c0_i32 = arith.constant 0 : i32
    %c0_i32_0 = arith.constant 0 : i32
    return %arg0, %c0_i32 : i32, i32
  }
  func.func @transform_1(%arg0: i32) -> (i32, i32) {
    %c0_i32 = arith.constant 0 : i32
    %c0_i32_0 = arith.constant 0 : i32
    %c0_i32_1 = arith.constant 0 : i32
    return %c0_i32, %c0_i32_0 : i32, i32
  }
  func.func @transform_2(%arg0: i32) -> (i32, i32) {
    %c0_i32 = arith.constant 0 : i32
    %c0_i32_0 = arith.constant 0 : i32
    return %arg0, %c0_i32 : i32, i32
  }
}

</mosaic_0001>

<bundles_post_ra>
// kernel: tpu_custom_call.1
= control target key start
LH: loop header
LB: loop body
LE: loop exit
PB: predicated region body
PF: predicated region fallthrough
CT: control target
= control target key end

     0   :  { %7 = vsyncpa [#allocation3], 0  ;;  %s330_s0 = inlined_call_operand.vmem [shape: s32[32,1], index: 0, kind: input, shape index: {}]   ;;  %s331_s1 = inlined_call_operand.hbm [shape: f32[64,128], index: 1, kind: input, shape index: {}]   ;;  %s332_s2 = inlined_call_operand.hbm [shape: f32[32,128], index: 2, kind: output, shape index: {}]  }
   0x1   :  { %8 = vsyncpa [#allocation4], 0  ;;  %s285_s9 = smov [#allocation2]  }
   0x2   :  { %s16_s10 = sshll.u32 %s285_s9, 4  ;;  %s17_s10 = int_to_ptr.vmem [resolvable:$true] %s16_s10 }
   0x3   :  { %s249_s11 = scalar_lea.vmem %s17_s10, 1024  ;;  %p254_p1 = scmp.lt.s32.totalorder %s17_s10, %s17_s10 }
   0x4   :  { %p250_p0 = scmp.ne.s32.totalorder %s17_s10, %s249_s11  ;;  %p255_p2 = scmp.lt.s32.totalorder %s249_s11, %s249_s11 }
   0x6   :  { %p256_p3 = por %p255_p2, %p254_p1 }
   0x8   :  { %p257_p4 = pnand %p256_p3, %p250_p0 }
   0xa   :  { %260 = shalt.err (!%p257_p4)
}
   0xb   :  { %s286_s12 = smov 128   ;;  %s287_s13 = smov 8  }
   0xc   :  { %22 = dma.hbm_to_vmem [thread:$0]  %s331_s1, 1024, %s17_s10, [#allocation3], %s286_s12, %s286_s12, %s287_s13  }
   0xd   :  { %281 = dma.done.wait [#allocation3], 1024  }
   0xe   :  { %282 = vsyncadd [#allocation3], 4294966272  ;;  %v288_v0 = vmov 0   ;;  %v27_v1 = vld [vmem:[%s330_s0 + $0x8] sm:$0xff]  ;;  %v26_v2 = vld [vmem:[%s330_s0] sm:$0xff]  ;;  %v30_v13 = vlaneseq  ;;  %vm60_vm0 = vcmask 523264  }
   0xf   :  { %240 = vset.pattern.permute.xlu1 %v288_v0  ;;  %239 = vset.pattern.permute.xlu0 %v288_v0  ;;  %v59_v3 = vld [vmem:[#allocation2 + $0x38] sm:$0xff]  ;;  %v58_v4 = vld [vmem:[#allocation2 + $0x30] sm:$0xff]  ;;  %v57_v7 = vld [vmem:[#allocation2 + $0x28] sm:$0xff]  ;;  %v289_v17 = vmov 0.0  }
  0x10   :  { %36 = vperm.xlu1 %240, %v27_v1   ;;  %33 = vperm.xlu0 %239, %v26_v2   ;;  %v29_v5 = vld [vmem:[%s330_s0 + $0x18] sm:$0xff]  ;;  %v28_v6 = vld [vmem:[%s330_s0 + $0x10] sm:$0xff]  ;;  %v56_v8 = vld [vmem:[#allocation2 + $0x20] sm:$0xff]  ;;  %v31_v14 = vand.u32 127, %v30_v13  ;;  %s290_s0 = smov [#allocation5]  }
  0x11   :  { %195 = vmatprep.subr.mxu0 %v59_v3  ;;  %217 = vmatprep.subr.mxu1 %v59_v3  ;;  %v55_v9 = vld [vmem:[#allocation2 + $0x18] sm:$0xff]  ;;  %v54_v10 = vld [vmem:[#allocation2 + $0x10] sm:$0xff]  ;;  %v53_v11 = vld [vmem:[#allocation2 + $0x8] sm:$0xff]  ;;  %s167_s23 = sshll.u32 %s290_s0, 4  ;;  %s168_s23 = int_to_ptr.vmem [resolvable:$true] %s167_s23 }
  0x12   :  { %196 = vmatpush3.msra.mxu0 %v59_v3  ;;  %225 = vmatpush3.msra.mxu1 %v59_v3  ;;  %v52_v12 = vld [vmem:[#allocation2] sm:$0xff]  ;;  %s261_s24 = scalar_lea.vmem %s168_s23, 512  ;;  %p266_p6 = scmp.lt.s32.totalorder %s168_s23, %s168_s23 }
  0x13   :  { %197 = vmatprep.subr.mxu0 %v58_v4  ;;  %218 = vmatprep.subr.mxu1 %v58_v4  ;;  %p262_p5 = scmp.ne.s32.totalorder %s168_s23, %s261_s24  ;;  %p267_p7 = scmp.lt.s32.totalorder %s261_s24, %s261_s24 }
  0x14   :  { %42 = vperm.xlu1 %240, %v29_v5   ;;  %39 = vperm.xlu0 %239, %v28_v6  }
  0x15   :  { %198 = vmatpush3.msra.mxu0 %v58_v4  ;;  %226 = vmatpush3.msra.mxu1 %v58_v4  ;;  %p268_p8 = por %p267_p7, %p266_p6 }
  0x16   :  { %199 = vmatprep.subr.mxu0 %v57_v7  ;;  %219 = vmatprep.subr.mxu1 %v57_v7 }
  0x17   :  { %200 = vmatpush3.msra.mxu0 %v57_v7  ;;  %227 = vmatpush3.msra.mxu1 %v57_v7  ;;  %p269_p9 = pnand %p268_p8, %p262_p5 }
  0x18   :  { %201 = vmatprep.subr.mxu0 %v56_v8  ;;  %220 = vmatprep.subr.mxu1 %v56_v8 }
  0x19   :  { %202 = vmatpush3.msra.mxu0 %v56_v8  ;;  %228 = vmatpush3.msra.mxu1 %v56_v8 }
  0x1a   :  { %203 = vmatprep.subr.mxu0 %v55_v9  ;;  %221 = vmatprep.subr.mxu1 %v55_v9 }
  0x1b   :  { %204 = vmatpush3.msra.mxu0 %v55_v9  ;;  %229 = vmatpush3.msra.mxu1 %v55_v9 }
  0x1c   :  { %205 = vmatprep.subr.mxu0 %v54_v10  ;;  %222 = vmatprep.subr.mxu1 %v54_v10 }
  0x1d   :  { %206 = vmatpush3.msra.mxu0 %v54_v10  ;;  %230 = vmatpush3.msra.mxu1 %v54_v10 }
  0x1e   :  { %207 = vmatprep.subr.mxu0 %v53_v11  ;;  %223 = vmatprep.subr.mxu1 %v53_v11 }
  0x1f   :  { %208 = vmatpush3.msra.mxu0 %v53_v11  ;;  %231 = vmatpush3.msra.mxu1 %v53_v11 }
  0x20   :  { %209 = vmatprep.subr.mxu0 %v52_v12  ;;  %224 = vmatprep.subr.mxu1 %v52_v12 }
  0x21   :  { %210 = vmatpush3.msra.mxu0 %v52_v12  ;;  %232 = vmatpush3.msra.mxu1 %v52_v12 }
  0x8b   :  { %v37_v15 = vpop.permute.xlu1 %36  ;;  %v34_v16 = vpop.permute.xlu0 %33 }
  0x8c   :  { %vm45_vm1 = vcmp.eq.s32.totalorder %v37_v15, %v31_v14  ;;  %vm44_vm2 = vcmp.eq.s32.totalorder %v34_v16, %v31_v14 }
  0x8d   :  { %v49_v18 = vsel %vm45_vm1, 1.0, %v289_v17  ;;  %v48_v19 = vsel %vm44_vm2, 1.0, %v289_v17 }
  0x8e   :  { %211 = vmatprep.mubr.msk.f32.mxu0 %vm60_vm0, %v48_v19 }
  0x8f   :  { %v43_v20 = vpop.permute.xlu1 %42  ;;  %212 = vmatmul.mubr.msk.f32.vlgmr.msra.gmra.mxu0 %vm60_vm0, %v49_v18  ;;  %v40_v21 = vpop.permute.xlu0 %39 }
  0x90   :  { %vm47_vm3 = vcmp.eq.s32.totalorder %v43_v20, %v31_v14  ;;  %vm46_vm4 = vcmp.eq.s32.totalorder %v40_v21, %v31_v14 }
  0x91   :  { %v51_v22 = vsel %vm47_vm3, 1.0, %v289_v17  ;;  %v50_v23 = vsel %vm46_vm4, 1.0, %v289_v17 }
  0x92   :  { %214 = vmatprep.mubr.msk.f32.mxu1 %vm60_vm0, %v50_v23 }
  0x93   :  { %215 = vmatmul.mubr.msk.f32.vlgmr.msra.gmra.mxu1 %vm60_vm0, %v51_v22 }
 0x14f   :  { %v213_v24 = vpop.f32.mrf.mxu0 }
 0x150   :  { %159 = vst [vmem:[#allocation5 + $0x8] sm:$0xff] %v213_v24 }
 0x151   :  { %v139_v25 = vpop.f32.mrf.mxu0 }
 0x152   :  { %158 = vst [vmem:[#allocation5] sm:$0xff] %v139_v25 }
 0x153   :  { %v216_v26 = vpop.f32.mrf.mxu1 }
 0x154   :  { %161 = vst [vmem:[#allocation5 + $0x18] sm:$0xff] %v216_v26 }
 0x155   :  { %v149_v27 = vpop.f32.mrf.mxu1 }
 0x156   :  { %160 = vst [vmem:[#allocation5 + $0x10] sm:$0xff] %v149_v27 }
 0x157   :  { %272 = shalt.err (!%p269_p9)
}
 0x158   :  { %173 = dma.vmem_to_hbm [thread:$0]  %s168_s23, 512, %s332_s2, [#allocation4], %s286_s12, %s286_s12, %s287_s13  }
 0x159   :  { %283 = dma.done.wait [#allocation4], 512  }
 0x15a   :  { %284 = vsyncadd [#allocation4], 4294966784 }
 0x15b   :  { %177 = vsyncpa [#allocation3], 1 }
 0x15c   :  { %178 = vsyncpa [#allocation4], 1 }

</bundles_post_ra>
